<compile_context>
chip_gen: v5e
topology: v5e:2x2
jax: 0.10.0
libtpu: 0.0.40
codegen_flags: <defaults>
</compile_context>

<pallas_src>
import jax
import jax.numpy as jnp
from jax import lax
from jax.experimental import pallas as pl
from jax.experimental.pallas import tpu as pltpu

EPS = 1e-5


def _bottleneck_kernel(x_ref, w1_ref, b1_ref, a_ref, b2_ref, w3_ref, b3_ref,
                       out_ref, pad_ref):
    B, H, WCin = x_ref.shape      # one batch tile, lane-dense (B, H, W*Cin)
    WP = a_ref.shape[1]           # W * planes
    M = B * H

    x = x_ref[...].reshape(M, WCin)                    # bf16, lane-dense
    x_f32 = x.astype(jnp.float32)

    # ---- conv1 (1x1, BN1 scale folded into weight) + bias + ReLU ----------
    h1 = jnp.dot(x, w1_ref[...], preferred_element_type=jnp.float32)
    h1 = jnp.maximum(h1 + b1_ref[...], 0.0)            # (M, W*P) f32

    # ---- conv2 (3x3, stride 1, pad 1) --------------------------------------
    # Horizontal taps + W zero-padding are folded into the banded weights
    # a_ref[ky]; vertical taps read shifted row windows from a scratch with a
    # 2-row halo (only the halo rows are zeroed, every step -- safe under
    # megacore "parallel" sharding, and ~nothing to store).
    pad_ref[:, 0:1, :] = jnp.zeros((B, 1, WP), jnp.float32)
    pad_ref[:, H + 1:H + 2, :] = jnp.zeros((B, 1, WP), jnp.float32)
    pad_ref[:, 1:H + 1, :] = h1.reshape(B, H, WP)

    h2 = jnp.zeros((M, WP), jnp.float32)
    for ky in range(3):
        win = pad_ref[:, ky:ky + H, :].reshape(M, WP).astype(jnp.bfloat16)
        h2 = h2 + jnp.dot(win, a_ref[ky], preferred_element_type=jnp.float32)
    h2 = jnp.maximum(h2 + b2_ref[...], 0.0)            # (M, W*P) f32

    # ---- conv3 (1x1, BN3 folded) + residual + ReLU --------------------------
    h3 = jnp.dot(h2.astype(jnp.bfloat16), w3_ref[...],
                 preferred_element_type=jnp.float32)
    out = jnp.maximum(h3 + b3_ref[...] + x_f32, 0.0)   # (M, W*Cout)
    out_ref[...] = out.reshape(out_ref.shape).astype(out_ref.dtype)


def _fold_bn(gamma, beta, mean, var):
    scale = gamma / jnp.sqrt(var + EPS)
    bias = beta - mean * scale
    return scale.astype(jnp.float32), bias.astype(jnp.float32)


def _block_diag(w_io, W):
    """1x1-conv weight (Cin, Cout) -> block-diagonal (W*Cin, W*Cout)."""
    cin, cout = w_io.shape
    eye = jnp.eye(W, dtype=jnp.float32)
    return jnp.einsum('ab,io->aibo', eye, w_io).reshape(W * cin, W * cout)


def _banded_conv2(w2_kkio, W):
    """3x3-conv weight (ky, kx, Cin, Cout) -> (3, W*Cin, W*Cout) banded mats.

    A[ky][j_in*Cin + p, j_out*Cout + q] = w2[ky, kx, p, q] with
    kx = j_in - j_out + 1 (zero outside the 3-tap band), which also realizes
    the zero padding along W.
    """
    _, _, cin, cout = w2_kkio.shape
    mats = []
    for ky in range(3):
        acc = jnp.zeros((W, cin, W, cout), jnp.float32)
        for kx in range(3):
            sel = jnp.eye(W, k=1 - kx, dtype=jnp.float32)   # sel[j_in, j_out]
            acc = acc + jnp.einsum('ab,pq->apbq', sel, w2_kkio[ky, kx])
        mats.append(acc.reshape(W * cin, W * cout))
    return jnp.stack(mats, axis=0)


def _pick_batch_tile(n):
    # Keep >= 2 grid steps (so v7x's two TensorCores both get work) while
    # batching several images per step to amortize per-step overhead.
    if n <= 2:
        return 1
    for bt in range(n // 2, 0, -1):
        if n % bt == 0:
            return bt
    return 1


def bottleneck_forward(x_nchw, params):
    """x_nchw: (N, Cin, H, W) float32; params from make_params()."""
    (w1, bn1), (w2, bn2), (w3, bn3) = params
    N, Cin, H, W = x_nchw.shape
    P = w1.shape[0]                  # conv1 weight: (planes, inplanes, 1, 1)
    Cout = w3.shape[0]               # conv3 weight: (planes*4, planes, 1, 1)
    assert Cin == Cout, "downsample=None requires inplanes == planes*4"

    # Lane-dense input: NCHW -> NHWC -> (N, H, W*Cin); bf16 operands (halves DMA).
    x_flat = jnp.transpose(x_nchw, (0, 2, 3, 1)).reshape(N, H, W * Cin)
    x_flat = x_flat.astype(jnp.bfloat16)

    # Fold BN scales into conv weights, build flattened-layout weight matrices.
    s1, b1 = _fold_bn(*bn1)
    s2, b2 = _fold_bn(*bn2)
    s3, b3 = _fold_bn(*bn3)

    w1m = jnp.transpose(w1[:, :, 0, 0], (1, 0)).astype(jnp.float32) * s1[None, :]
    w2m = jnp.transpose(w2, (2, 3, 1, 0)).astype(jnp.float32) * s2[None, None, None, :]
    w3m = jnp.transpose(w3[:, :, 0, 0], (1, 0)).astype(jnp.float32) * s3[None, :]

    w1_big = _block_diag(w1m, W).astype(jnp.bfloat16)       # (W*Cin, W*P)
    a_big = _banded_conv2(w2m, W).astype(jnp.bfloat16)      # (3, W*P, W*P)
    w3_big = _block_diag(w3m, W).astype(jnp.bfloat16)       # (W*P, W*Cout)
    b1_big = jnp.tile(b1, W).reshape(1, W * P)
    b2_big = jnp.tile(b2, W).reshape(1, W * P)
    b3_big = jnp.tile(b3, W).reshape(1, W * Cout)

    bt = _pick_batch_tile(N)
    rep2 = lambda n: (0, 0)
    rep3 = lambda n: (0, 0, 0)

    kernel = pl.pallas_call(
        _bottleneck_kernel,
        out_shape=jax.ShapeDtypeStruct((N, H, W * Cout), jnp.float32),
        grid_spec=pltpu.PrefetchScalarGridSpec(
            num_scalar_prefetch=0,
            grid=(N // bt,),
            in_specs=[
                pl.BlockSpec((bt, H, W * Cin), lambda n: (n, 0, 0)),
                pl.BlockSpec((W * Cin, W * P), rep2),
                pl.BlockSpec((1, W * P), rep2),
                pl.BlockSpec((3, W * P, W * P), rep3),
                pl.BlockSpec((1, W * P), rep2),
                pl.BlockSpec((W * P, W * Cout), rep2),
                pl.BlockSpec((1, W * Cout), rep2),
            ],
            out_specs=pl.BlockSpec((bt, H, W * Cout), lambda n: (n, 0, 0)),
            scratch_shapes=[pltpu.VMEM((bt, H + 2, W * P), jnp.float32)],
        ),
        compiler_params=pltpu.CompilerParams(
            dimension_semantics=("parallel",),          # batch axis is independent
            vmem_limit_bytes=32 * 1024 * 1024,          # safe on v5e/v6e/v7x
        ),
    )
    out_flat = kernel(x_flat, w1_big, b1_big, a_big, b2_big, w3_big, b3_big)
    out_nhwc = out_flat.reshape(N, H, W, Cout)
    return jnp.transpose(out_nhwc, (0, 3, 1, 2))   # back to NCHW


def make_params(key, inplanes, planes):
    """Deterministic synthetic parameters matching Bottleneck.__init__ shapes."""
    ks = jax.random.split(key, 15)
    exp = 4 * planes

    def bn_params(k0, k1, k2, k3, c):
        gamma = jax.random.uniform(k0, (c,), jnp.float32, 0.5, 1.5)
        beta = 0.1 * jax.random.normal(k1, (c,), jnp.float32)
        mean = 0.1 * jax.random.normal(k2, (c,), jnp.float32)
        var = jax.random.uniform(k3, (c,), jnp.float32, 0.5, 1.5)
        return gamma, beta, mean, var

    w1 = 0.2 * jax.random.normal(ks[0], (planes, inplanes, 1, 1), jnp.float32)
    w2 = 0.2 * jax.random.normal(ks[1], (planes, planes, 3, 3), jnp.float32)
    w3 = 0.2 * jax.random.normal(ks[2], (exp, planes, 1, 1), jnp.float32)
    bn1 = bn_params(ks[3], ks[4], ks[5], ks[6], planes)
    bn2 = bn_params(ks[7], ks[8], ks[9], ks[10], planes)
    bn3 = bn_params(ks[11], ks[12], ks[13], ks[14], exp)
    return (w1, bn1), (w2, bn2), (w3, bn3)


def reference_forward(x_nchw, params):
    """Pure-JAX (XLA conv, f32) reference for the same eval-mode Bottleneck."""
    (w1, bn1), (w2, bn2), (w3, bn3) = params
    x = jnp.transpose(x_nchw, (0, 2, 3, 1)).astype(jnp.float32)   # NHWC
    dn = ("NHWC", "HWIO", "NHWC")

    def conv(x, w_oihw, pad):
        w = jnp.transpose(w_oihw, (2, 3, 1, 0))                   # HWIO
        return lax.conv_general_dilated(x, w, (1, 1), pad, dimension_numbers=dn)

    def bn(y, p):
        s, b = _fold_bn(*p)
        return y * s.reshape(1, 1, 1, -1) + b.reshape(1, 1, 1, -1)

    out = jax.nn.relu(bn(conv(x, w1, "VALID"), bn1))
    out = jax.nn.relu(bn(conv(out, w2, ((1, 1), (1, 1))), bn2))
    out = bn(conv(out, w3, "VALID"), bn3)
    out = jax.nn.relu(out + x)
    return jnp.transpose(out, (0, 3, 1, 2))


if __name__ == "__main__":
    N, planes, H, W = 2, 4, 16, 16
    inplanes = planes * 4           # required for downsample=None residual add

    key = jax.random.PRNGKey(0)
    kx, kp = jax.random.split(key)
    x = jax.random.normal(kx, (N, inplanes, H, W), jnp.float32)   # NCHW, like PyTorch
    params = make_params(kp, inplanes, planes)

    out = jax.block_until_ready(bottleneck_forward(x, params))
    ref = jax.block_until_ready(reference_forward(x, params))

    assert out.shape == (N, inplanes, H, W)
    err = float(jnp.max(jnp.abs(out - ref)))
    # bf16 matmul operands (f32 accumulation) -> loosened tolerance vs f32 ref.
    assert jnp.allclose(out, ref, rtol=2e-2, atol=5e-2), err
    print("KERNEL_OK")
</pallas_src>

<mosaic_0001>
module attributes {stable_mosaic.version = 11 : i64} {
  func.func @_bottleneck_kernel(%arg0: i32, %arg1: memref<1x16x256xbf16, #tpu.memory_space<vmem>>, %arg2: memref<256x64xbf16, #tpu.memory_space<vmem>>, %arg3: memref<1x64xf32, #tpu.memory_space<vmem>>, %arg4: memref<3x64x64xbf16, #tpu.memory_space<vmem>>, %arg5: memref<1x64xf32, #tpu.memory_space<vmem>>, %arg6: memref<64x256xbf16, #tpu.memory_space<vmem>>, %arg7: memref<1x256xf32, #tpu.memory_space<vmem>>, %arg8: memref<1x16x256xf32, #tpu.memory_space<vmem>>, %arg9: memref<1x18x64xf32, #tpu.memory_space<vmem>>) attributes {dimension_semantics = [#tpu.dimension_semantics<parallel>], iteration_bounds = array<i64: 2>, scalar_prefetch = 0 : i64, scratch_operands = 1 : i64, tpu.core_type = #tpu.core_type<tc>, window_params = [{transform_indices = @transform_0, window_bounds = array<i64: 1, 16, 256>}, {pipeline_mode = #tpu.pipeline_mode<synchronous>, transform_indices = @transform_1, window_bounds = array<i64: 256, 64>}, {pipeline_mode = #tpu.pipeline_mode<synchronous>, transform_indices = @transform_2, window_bounds = array<i64: 1, 64>}, {pipeline_mode = #tpu.pipeline_mode<synchronous>, transform_indices = @transform_3, window_bounds = array<i64: 3, 64, 64>}, {pipeline_mode = #tpu.pipeline_mode<synchronous>, transform_indices = @transform_4, window_bounds = array<i64: 1, 64>}, {pipeline_mode = #tpu.pipeline_mode<synchronous>, transform_indices = @transform_5, window_bounds = array<i64: 64, 256>}, {pipeline_mode = #tpu.pipeline_mode<synchronous>, transform_indices = @transform_6, window_bounds = array<i64: 1, 256>}, {transform_indices = @transform_7, window_bounds = array<i64: 1, 16, 256>}]} {
    %c0 = arith.constant 0 : index
    %c0_0 = arith.constant 0 : index
    %c0_1 = arith.constant 0 : index
    %0 = vector.load %arg1[%c0, %c0_0, %c0_1] : memref<1x16x256xbf16, #tpu.memory_space<vmem>>, vector<1x16x256xbf16>
    %1 = vector.shape_cast %0 : vector<1x16x256xbf16> to vector<16x256xbf16>
    %2 = arith.extf %1 : vector<16x256xbf16> to vector<16x256xf32>
    %c0_2 = arith.constant 0 : index
    %c0_3 = arith.constant 0 : index
    %3 = vector.load %arg2[%c0_2, %c0_3] : memref<256x64xbf16, #tpu.memory_space<vmem>>, vector<256x64xbf16>
    %cst = arith.constant dense<0.000000e+00> : vector<16x64xf32>
    %4 = tpu.matmul %1, %3, %cst {dimension_numbers = #tpu.dot_dimension_numbers<[1], [0], [0], [1], [0, 0, 1, 1], [], []>} : vector<16x256xbf16>, vector<256x64xbf16>, vector<16x64xf32> -> vector<16x64xf32>
    %c0_4 = arith.constant 0 : index
    %c0_5 = arith.constant 0 : index
    %5 = vector.load %arg3[%c0_4, %c0_5] : memref<1x64xf32, #tpu.memory_space<vmem>>, vector<1x64xf32>
    %6 = vector.broadcast %5 : vector<1x64xf32> to vector<16x64xf32>
    %7 = arith.addf %4, %6 : vector<16x64xf32>
    %cst_6 = arith.constant 0.000000e+00 : f32
    %8 = vector.broadcast %cst_6 : f32 to vector<16x64xf32>
    %9 = arith.maximumf %7, %8 : vector<16x64xf32>
    %cst_7 = arith.constant 0.000000e+00 : f32
    %10 = vector.broadcast %cst_7 : f32 to vector<1x1x64xf32>
    %c0_8 = arith.constant 0 : index
    %c0_9 = arith.constant 0 : index
    %c0_10 = arith.constant 0 : index
    %11 = vector.load %arg9[%c0_8, %c0_9, %c0_10] : memref<1x18x64xf32, #tpu.memory_space<vmem>>, vector<1x1x64xf32>
    tpu.vector_store %arg9[%c0_8, %c0_9, %c0_10], %10 {strides = array<i32>} : memref<1x18x64xf32, #tpu.memory_space<vmem>>, vector<1x1x64xf32>,
    %cst_11 = arith.constant 0.000000e+00 : f32
    %12 = vector.broadcast %cst_11 : f32 to vector<1x1x64xf32>
    %c0_12 = arith.constant 0 : index
    %c17 = arith.constant 17 : index
    %c0_13 = arith.constant 0 : index
    %13 = vector.load %arg9[%c0_12, %c17, %c0_13] : memref<1x18x64xf32, #tpu.memory_space<vmem>>, vector<1x1x64xf32>
    tpu.vector_store %arg9[%c0_12, %c17, %c0_13], %12 {strides = array<i32>} : memref<1x18x64xf32, #tpu.memory_space<vmem>>, vector<1x1x64xf32>,
    %14 = vector.shape_cast %9 : vector<16x64xf32> to vector<1x16x64xf32>
    %c0_14 = arith.constant 0 : index
    %c1 = arith.constant 1 : index
    %c0_15 = arith.constant 0 : index
    %15 = vector.load %arg9[%c0_14, %c1, %c0_15] : memref<1x18x64xf32, #tpu.memory_space<vmem>>, vector<1x16x64xf32>
    tpu.vector_store %arg9[%c0_14, %c1, %c0_15], %14 {strides = array<i32>} : memref<1x18x64xf32, #tpu.memory_space<vmem>>, vector<1x16x64xf32>,
    %cst_16 = arith.constant 0.000000e+00 : f32
    %16 = vector.broadcast %cst_16 : f32 to vector<16x64xf32>
    %c0_17 = arith.constant 0 : index
    %c0_18 = arith.constant 0 : index
    %c0_19 = arith.constant 0 : index
    %17 = vector.load %arg9[%c0_17, %c0_18, %c0_19] : memref<1x18x64xf32, #tpu.memory_space<vmem>>, vector<1x16x64xf32>
    %18 = vector.shape_cast %17 : vector<1x16x64xf32> to vector<16x64xf32>
    %19 = arith.truncf %18 : vector<16x64xf32> to vector<16x64xbf16>
    %c0_20 = arith.constant 0 : index
    %c0_21 = arith.constant 0 : index
    %c0_22 = arith.constant 0 : index
    %20 = vector.load %arg4[%c0_20, %c0_21, %c0_22] : memref<3x64x64xbf16, #tpu.memory_space<vmem>>, vector<1x64x64xbf16>
    %21 = vector.shape_cast %20 : vector<1x64x64xbf16> to vector<64x64xbf16>
    %cst_23 = arith.constant dense<0.000000e+00> : vector<16x64xf32>
    %22 = tpu.matmul %19, %21, %cst_23 {dimension_numbers = #tpu.dot_dimension_numbers<[1], [0], [0], [1], [0, 0, 1, 1], [], []>} : vector<16x64xbf16>, vector<64x64xbf16>, vector<16x64xf32> -> vector<16x64xf32>
    %23 = arith.addf %16, %22 : vector<16x64xf32>
    %c0_24 = arith.constant 0 : index
    %c1_25 = arith.constant 1 : index
    %c0_26 = arith.constant 0 : index
    %24 = vector.load %arg9[%c0_24, %c1_25, %c0_26] : memref<1x18x64xf32, #tpu.memory_space<vmem>>, vector<1x16x64xf32>
    %25 = vector.shape_cast %24 : vector<1x16x64xf32> to vector<16x64xf32>
    %26 = arith.truncf %25 : vector<16x64xf32> to vector<16x64xbf16>
    %c1_27 = arith.constant 1 : index
    %c0_28 = arith.constant 0 : index
    %c0_29 = arith.constant 0 : index
    %27 = vector.load %arg4[%c1_27, %c0_28, %c0_29] : memref<3x64x64xbf16, #tpu.memory_space<vmem>>, vector<1x64x64xbf16>
    %28 = vector.shape_cast %27 : vector<1x64x64xbf16> to vector<64x64xbf16>
    %cst_30 = arith.constant dense<0.000000e+00> : vector<16x64xf32>
    %29 = tpu.matmul %26, %28, %cst_30 {dimension_numbers = #tpu.dot_dimension_numbers<[1], [0], [0], [1], [0, 0, 1, 1], [], []>} : vector<16x64xbf16>, vector<64x64xbf16>, vector<16x64xf32> -> vector<16x64xf32>
    %30 = arith.addf %23, %29 : vector<16x64xf32>
    %c0_31 = arith.constant 0 : index
    %c2 = arith.constant 2 : index
    %c0_32 = arith.constant 0 : index
    %31 = vector.load %arg9[%c0_31, %c2, %c0_32] : memref<1x18x64xf32, #tpu.memory_space<vmem>>, vector<1x16x64xf32>
    %32 = vector.shape_cast %31 : vector<1x16x64xf32> to vector<16x64xf32>
    %33 = arith.truncf %32 : vector<16x64xf32> to vector<16x64xbf16>
    %c2_33 = arith.constant 2 : index
    %c0_34 = arith.constant 0 : index
    %c0_35 = arith.constant 0 : index
    %34 = vector.load %arg4[%c2_33, %c0_34, %c0_35] : memref<3x64x64xbf16, #tpu.memory_space<vmem>>, vector<1x64x64xbf16>
    %35 = vector.shape_cast %34 : vector<1x64x64xbf16> to vector<64x64xbf16>
    %cst_36 = arith.constant dense<0.000000e+00> : vector<16x64xf32>
    %36 = tpu.matmul %33, %35, %cst_36 {dimension_numbers = #tpu.dot_dimension_numbers<[1], [0], [0], [1], [0, 0, 1, 1], [], []>} : vector<16x64xbf16>, vector<64x64xbf16>, vector<16x64xf32> -> vector<16x64xf32>
    %37 = arith.addf %30, %36 : vector<16x64xf32>
    %c0_37 = arith.constant 0 : index
    %c0_38 = arith.constant 0 : index
    %38 = vector.load %arg5[%c0_37, %c0_38] : memref<1x64xf32, #tpu.memory_space<vmem>>, vector<1x64xf32>
    %39 = vector.broadcast %38 : vector<1x64xf32> to vector<16x64xf32>
    %40 = arith.addf %37, %39 : vector<16x64xf32>
    %cst_39 = arith.constant 0.000000e+00 : f32
    %41 = vector.broadcast %cst_39 : f32 to vector<16x64xf32>
    %42 = arith.maximumf %40, %41 : vector<16x64xf32>
    %43 = arith.truncf %42 : vector<16x64xf32> to vector<16x64xbf16>
    %c0_40 = arith.constant 0 : index
    %c0_41 = arith.constant 0 : index
    %44 = vector.load %arg6[%c0_40, %c0_41] : memref<64x256xbf16, #tpu.memory_space<vmem>>, vector<64x256xbf16>
    %cst_42 = arith.constant dense<0.000000e+00> : vector<16x256xf32>
    %45 = tpu.matmul %43, %44, %cst_42 {dimension_numbers = #tpu.dot_dimension_numbers<[1], [0], [0], [1], [0, 0, 1, 1], [], []>} : vector<16x64xbf16>, vector<64x256xbf16>, vector<16x256xf32> -> vector<16x256xf32>
    %c0_43 = arith.constant 0 : index
    %c0_44 = arith.constant 0 : index
    %46 = vector.load %arg7[%c0_43, %c0_44] : memref<1x256xf32, #tpu.memory_space<vmem>>, vector<1x256xf32>
    %47 = vector.broadcast %46 : vector<1x256xf32> to vector<16x256xf32>
    %48 = arith.addf %45, %47 : vector<16x256xf32>
    %49 = arith.addf %48, %2 : vector<16x256xf32>
    %cst_45 = arith.constant 0.000000e+00 : f32
    %50 = vector.broadcast %cst_45 : f32 to vector<16x256xf32>
    %51 = arith.maximumf %49, %50 : vector<16x256xf32>
    %52 = vector.shape_cast %51 : vector<16x256xf32> to vector<1x16x256xf32>
    %c0_46 = arith.constant 0 : index
    %c0_47 = arith.constant 0 : index
    %c0_48 = arith.constant 0 : index
    %53 = vector.load %arg8[%c0_46, %c0_47, %c0_48] : memref<1x16x256xf32, #tpu.memory_space<vmem>>, vector<1x16x256xf32>
    tpu.vector_store %arg8[%c0_46, %c0_47, %c0_48], %52 {strides = array<i32>} : memref<1x16x256xf32, #tpu.memory_space<vmem>>, vector<1x16x256xf32>,
    return
  }
  func.func @transform_0(%arg0: i32) -> (i32, i32, i32) {
    %c0_i32 = arith.constant 0 : i32
    %c0_i32_0 = arith.constant 0 : i32
    %c0_i32_1 = arith.constant 0 : i32
    return %arg0, %c0_i32, %c0_i32_0 : i32, i32, i32
  }
  func.func @transform_1(%arg0: i32) -> (i32, i32) {
    %c0_i32 = arith.constant 0 : i32
    %c0_i32_0 = arith.constant 0 : i32
    %c0_i32_1 = arith.constant 0 : i32
    return %c0_i32, %c0_i32_0 : i32, i32
  }
  func.func @transform_2(%arg0: i32) -> (i32, i32) {
    %c0_i32 = arith.constant 0 : i32
    %c0_i32_0 = arith.constant 0 : i32
    %c0_i32_1 = arith.constant 0 : i32
    return %c0_i32, %c0_i32_0 : i32, i32
  }
  func.func @transform_3(%arg0: i32) -> (i32, i32, i32) {
    %c0_i32 = arith.constant 0 : i32
    %c0_i32_0 = arith.constant 0 : i32
    %c0_i32_1 = arith.constant 0 : i32
    %c0_i32_2 = arith.constant 0 : i32
    return %c0_i32, %c0_i32_0, %c0_i32_1 : i32, i32, i32
  }
  func.func @transform_4(%arg0: i32) -> (i32, i32) {
    %c0_i32 = arith.constant 0 : i32
    %c0_i32_0 = arith.constant 0 : i32
    %c0_i32_1 = arith.constant 0 : i32
    return %c0_i32, %c0_i32_0 : i32, i32
  }
  func.func @transform_5(%arg0: i32) -> (i32, i32) {
    %c0_i32 = arith.constant 0 : i32
    %c0_i32_0 = arith.constant 0 : i32
    %c0_i32_1 = arith.constant 0 : i32
    return %c0_i32, %c0_i32_0 : i32, i32
  }
  func.func @transform_6(%arg0: i32) -> (i32, i32) {
    %c0_i32 = arith.constant 0 : i32
    %c0_i32_0 = arith.constant 0 : i32
    %c0_i32_1 = arith.constant 0 : i32
    return %c0_i32, %c0_i32_0 : i32, i32
  }
  func.func @transform_7(%arg0: i32) -> (i32, i32, i32) {
    %c0_i32 = arith.constant 0 : i32
    %c0_i32_0 = arith.constant 0 : i32
    %c0_i32_1 = arith.constant 0 : i32
    return %arg0, %c0_i32, %c0_i32_0 : i32, i32, i32
  }
}

</mosaic_0001>

<bundles_post_ra>
// kernel: tpu_custom_call.1
= control target key start
LH: loop header
LB: loop body
LE: loop exit
PB: predicated region body
PF: predicated region fallthrough
CT: control target
= control target key end

     0   :  { %12 = vsyncpa [#allocation4], 0  ;;  %s1593_s0 = inlined_call_operand.vmem [shape: bf16[2,16,256], index: 0, kind: input, shape index: {}]   ;;  %s1594_s1 = inlined_call_operand.vmem [shape: bf16[256,64], index: 1, kind: input, shape index: {}]   ;;  %s1595_s2 = inlined_call_operand.hbm [shape: f32[1,64], index: 2, kind: input, shape index: {}]   ;;  %s1596_s3 = inlined_call_operand.vmem [shape: bf16[3,64,64], index: 3, kind: input, shape index: {}]   ;;  %s1597_s4 = inlined_call_operand.hbm [shape: f32[1,64], index: 4, kind: input, shape index: {}]   ;;  %s1598_s5 = inlined_call_operand.vmem [shape: bf16[64,256], index: 5, kind: input, shape index: {}]   ;;  %s1599_s6 = inlined_call_operand.vmem [shape: f32[1,256], index: 6, kind: input, shape index: {}]   ;;  %s1600_s7 = inlined_call_operand.hbm [shape: f32[2,16,256], index: 7, kind: output, shape index: {}]  }
   0x1   :  { %13 = vsyncpa [#allocation7], 0 }
   0x2   :  { %14 = vsyncpa [#allocation5], 0 }
   0x3   :  { %16 = vsyncpa [#allocation5 + $0x1], 0  ;;  %s1329_s24 = smov 0   ;;  %s1331_s25 = smov 0  }
   0x4   :  { %s1333_s26 = smov 0   ;;  %s1335_s27 = smov 0  }
   0x5 LB: > { %s1350_s28 = sadd.s32 4294967295, %s1282_s27   ;;  %s858_s29 = sadd.s32 4294967294, %s1282_s27   ;;  %s1282_s27 = sphi %s1335_s27, %s1607_s27   ;;  %s1278_s26 = sphi %s1333_s26, %s1606_s26   ;;  %s1274_s25 = sphi %s1331_s25, %s1605_s25   ;;  %s1270_s24 = sphi %s1329_s24, %s1604_s24  }
   0x6   : > { %s1354_s30 = sadd.s32 1, %s1282_s27   ;;  %s181_s8 = sadd.s32 1, %s1278_s26 }
   0x7   : > { %s178_s9 = ssub.s32 %s1282_s27, %s1354_s30  ;;  %p191_p0 = scmp.ne.s32.totalorder %s1278_s26, %s1274_s25 }
   0x8   : > { %p179_p1 = scmp.eq.s32.totalorder %s178_s9, 0  ;;  %p192_p2 = scmp.eq.s32.totalorder %s1350_s28, 1 }
   0x9   : > { %p197_p3 = scmp.ne.s32.totalorder %s1274_s25, %s1270_s24  ;;  %p198_p4 = scmp.eq.s32.totalorder %s858_s29, 1 }
   0xa   : > { %s1365_s10 = scalar_select %p179_p1, %s1278_s26, %s181_s8  }
   0xb   : > { %p1367_p5 = por %p192_p2, %p191_p0  ;;  %p1371_p6 = por %p198_p4, %p197_p3 }
   0xc   : > { %p859_p7 = scmp.ge.s32.totalorder %s1282_s27, 1  ;;  %p205_p8 = scmp.lt.s32.totalorder %s1282_s27, 3 }
   0xd   : > { %p1108_p9 = scmp.eq.s32.totalorder %s1350_s28, 0  ;;  %s220_s16 = sshll.u32 %s1595_s2, 4  ;;  %s221_s16 = int_to_ptr.hbm [resolvable:$true] %s220_s16 }
   0xe   : > { %p1378_p10 = pnand %p859_p7, %p205_p8  ;;  %s1284_s17 = smov [#allocation3]  }
   0xf   : > { %s222_s18 = sshll.u32 %s1284_s17, 4  ;;  %s235_s21 = sshll.u32 %s1597_s4, 4  ;;  %s223_s18 = int_to_ptr.vmem [resolvable:$true] %s222_s18  ;;  %s236_s21 = int_to_ptr.hbm [resolvable:$true] %s235_s21 }
  0x10   : > { %p1097_p11 = pneg %p1378_p10  ;;  %s1285_s22 = smov [#allocation6]  }
  0x11   : > { %s237_s23 = sshll.u32 %s1285_s22, 4  ;;  %264 = sbr.rel (%p1378_p10) target bundleno = 521 (0x209), region = 48  ;;  %s238_s23 = int_to_ptr.vmem [resolvable:$true] %s237_s23 }
  0x12   : > { %p1098_p12 = pnand %p1108_p9, %p1097_p11 }
  0x14   : > { %1100 = dma.hbm_to_vmem [thread:$0]  (!%p1098_p12), %s221_s16, 16, %s223_s18, [#allocation4]  }
  0x15   : > { %1103 = dma.hbm_to_vmem [thread:$0]  (!%p1098_p12), %s236_s21, 16, %s238_s23, [#allocation7]  }
  0x16   : > { %1257 = dma.done.wait (%p1108_p9), [#allocation4], 16  }
  0x17   : > { %1259 = vsyncadd (%p1108_p9), [#allocation4], 4294967280 }
  0x18   : > { %1261 = dma.done.wait (%p1108_p9), [#allocation7], 16  }
  0x19   : > { %1263 = vsyncadd (%p1108_p9), [#allocation7], 4294967280  ;;  %v1057_v0 = vld [vmem:[%s1594_s1 + $0x38] sm:$0xff]  ;;  %v1056_v2 = vld [vmem:[%s1594_s1 + $0x30] sm:$0xff]  ;;  %p302_p13 = scmp.lt.s32.totalorder %s1350_s28, 1  ;;  %vm486_vm0 = vcmask 516096  }
  0x1a   : > { %v1065_v1 = vld [vmem:[%s1594_s1 + $0x78] sm:$0xff]  ;;  %456 = vmatpush.bf16.msra.mxu0 %v1057_v0  ;;  %v1064_v3 = vld [vmem:[%s1594_s1 + $0x70] sm:$0xff]  ;;  %v1055_v4 = vld [vmem:[%s1594_s1 + $0x28] sm:$0xff]  ;;  %v1286_v22 = vmov 0.0   ;;  %vm489_vm1 = vcmask 523264   ;;  %s299_s8 = sand.u32 1, %s1274_s25  }
  0x1b   : > { %470 = vmatpush.bf16.msra.mxu1 %v1065_v1  ;;  %v1063_v5 = vld [vmem:[%s1594_s1 + $0x68] sm:$0xff]  ;;  %v1054_v6 = vld [vmem:[%s1594_s1 + $0x20] sm:$0xff]  ;;  %v1053_v8 = vld [vmem:[%s1594_s1 + $0x18] sm:$0xff]  ;;  %s303_s16 = scalar_select %p302_p13, %s1350_s28, 1  ;;  %487 = vst.msk [vmem:[#allocation2] sm:$0x1] %vm486_vm0, %v1286_v22 }
  0x1c   : > { %v1062_v7 = vld [vmem:[%s1594_s1 + $0x60] sm:$0xff]  ;;  %v1061_v9 = vld [vmem:[%s1594_s1 + $0x58] sm:$0xff]  ;;  %v1052_v10 = vld [vmem:[%s1594_s1 + $0x10] sm:$0xff]  ;;  %488 = vst.msk [vmem:[#allocation2 + $0x11] sm:$0x1] %vm486_vm0, %v1286_v22  ;;  %s866_s9 = sshll.u32 %s299_s8, 5 }
  0x1d   : > { %v1060_v11 = vld [vmem:[%s1594_s1 + $0x50] sm:$0xff]  ;;  %s1047_s21 = sshll.u32 %s303_s16, 4  ;;  %v1051_v12 = vld [vmem:[%s1594_s1 + $0x8] sm:$0xff]  ;;  %v1050_v14 = vld [vmem:[%s1594_s1] sm:$0xff]  ;;  %s301_s13 = scalar_lea.vmem [#allocation8], %s866_s9 }
  0x1e   : > { %457 = vmatpush.bf16.msra.mxu0 %v1056_v2  ;;  %v1059_v13 = vld [vmem:[%s1594_s1 + $0x48] sm:$0xff]  ;;  %s1449_s14 = scalar_lea.vmem %s1593_s0, %s1047_s21  ;;  %v1058_v15 = vld [vmem:[%s1594_s1 + $0x40] sm:$0xff]  ;;  %v1073_v23 = vld [vmem:[%s1596_s3 + $0x38] sm:$0xff]  ;;  %s1086_s15 = sshll.u32 %s1350_s28, 5 }
  0x1f   : > { %471 = vmatpush.bf16.msra.mxu1 %v1064_v3  ;;  %v871_v16 = vld [vmem:[%s1449_s14] sm:$0xf]  ;;  %v1049_v17 = vld [vmem:[%s1449_s14 + $0x4] sm:$0xf0]  ;;  %v1048_v18 = vld [vmem:[%s1449_s14 + $0x4] sm:$0xf]  ;;  %546 = vmatpush.bf16.msra.mxu2 %v1073_v23 }
  0x20   : > { %v873_v19 = vld [vmem:[%s1449_s14 + $0x8] sm:$0xf0]  ;;  %v872_v20 = vor.u32 %v1049_v17, %v871_v16  ;;  %v1069_v24 = vld [vmem:[%s1596_s3 + $0x18] sm:$0xff]  ;;  %v1072_v25 = vld [vmem:[%s1596_s3 + $0x30] sm:$0xff]  ;;  %s771_s18 = sshll.u32 %s301_s13, 4  ;;  %s759_s28 = scalar_lea.sflag [#allocation5], %s299_s8  ;;  %s772_s18 = int_to_ptr.vmem [resolvable:$true] %s771_s18 }
  0x21   : > { %v876_v21 = vor.u32 %v1048_v18, %v873_v19  ;;  %587 = vmatpush.bf16.msra.mxu3 %v1069_v24  ;;  %v1068_v26 = vld [vmem:[%s1596_s3 + $0x10] sm:$0xff]  ;;  %v1071_v27 = vld [vmem:[%s1596_s3 + $0x28] sm:$0xff]  ;;  %v1070_v29 = vld [vmem:[%s1596_s3 + $0x20] sm:$0xff]  ;;  %s1232_s29 = scalar_lea.hbm %s1600_s7, 64 }
  0x22   : > { %458 = vmatpush.bf16.msra.mxu0 %v1055_v4  ;;  %v1067_v28 = vld [vmem:[%s1596_s3 + $0x8] sm:$0xff]  ;;  %v1066_v30 = vld [vmem:[%s1596_s3] sm:$0xff]  ;;  %v1077_v31 = vld [vmem:[%s1596_s3 + $0x58] sm:$0xff] }
  0x23   : > { %472 = vmatpush.bf16.msra.mxu1 %v1063_v5  ;;  %547 = vmatpush.bf16.msra.mxu2 %v1072_v25  ;;  %v1076_v32 = vld [vmem:[%s1596_s3 + $0x50] sm:$0xff]  ;;  %v1150_v33 = vld [vmem:[#allocation3] ss:$0 sm:$0xff]  ;;  %v1075_v34 = vld [vmem:[%s1596_s3 + $0x48] sm:$0xff] }
  0x24   : > { %v1074_v38 = vld [vmem:[%s1596_s3 + $0x40] sm:$0xff]  ;;  %v1034_v55 = vld [vmem:[%s1598_s5 + $0x30] sm:$0xf]  ;;  %v1085_v56 = vld [vmem:[%s1598_s5 + $0x34] sm:$0xf0] }
  0x25   : > { %588 = vmatpush.bf16.msra.mxu3 %v1068_v26  ;;  %v1084_v57 = vld [vmem:[%s1598_s5 + $0x34] sm:$0xf]  ;;  %v1035_v58 = vor.u32 %v1085_v56, %v1034_v55  ;;  %v1036_v59 = vld [vmem:[%s1598_s5 + $0x38] sm:$0xf0]  ;;  %v1026_v61 = vld [vmem:[%s1598_s5 + $0x20] sm:$0xf] }
  0x26   : > { %459 = vmatpush.bf16.msra.mxu0 %v1054_v6  ;;  %v1039_v60 = vor.u32 %v1084_v57, %v1036_v59  ;;  %v1083_v62 = vld [vmem:[%s1598_s5 + $0x24] sm:$0xf0]  ;;  %v1082_v63 = vld [vmem:[%s1598_s5 + $0x24] sm:$0xf]  ;;  %v1028_v1 = vld [vmem:[%s1598_s5 + $0x28] sm:$0xf0] }
  0x27   : > { %473 = vmatpush.bf16.msra.mxu1 %v1062_v7  ;;  %548 = vmatpush.bf16.msra.mxu2 %v1071_v27  ;;  %v1027_v0 = vor.u32 %v1083_v62, %v1026_v61  ;;  %v1031_v2 = vor.u32 %v1082_v63, %v1028_v1  ;;  %v1018_v3 = vld [vmem:[%s1598_s5 + $0x10] sm:$0xf]  ;;  %v1081_v4 = vld [vmem:[%s1598_s5 + $0x14] sm:$0xf0]  ;;  %v1080_v5 = vld [vmem:[%s1598_s5 + $0x14] sm:$0xf] }
  0x28   : > { %v1019_v6 = vor.u32 %v1081_v4, %v1018_v3  ;;  %v1020_v7 = vld [vmem:[%s1598_s5 + $0x18] sm:$0xf0]  ;;  %v1151_v22 = vld [vmem:[#allocation6] ss:$0 sm:$0xff] }
  0x29   : > { %589 = vmatpush.bf16.msra.mxu3 %v1067_v28 }
  0x2a   : > { %460 = vmatpush.bf16.msra.mxu0 %v1053_v8  ;;  %v1023_v8 = vor.u32 %v1080_v5, %v1020_v7 }
  0x2b   : > { %474 = vmatpush.bf16.msra.mxu1 %v1061_v9  ;;  %549 = vmatpush.bf16.msra.mxu2 %v1070_v29  ;;  %v1010_v9 = vld [vmem:[%s1598_s5] sm:$0xf] }
  0x2d   : > { %590 = vmatpush.bf16.msra.mxu3 %v1066_v30 }
  0x2e   : > { %461 = vmatpush.bf16.msra.mxu0 %v1052_v10  ;;  %v1079_v10 = vld [vmem:[%s1598_s5 + $0x4] sm:$0xf0] }
  0x2f   : > { %475 = vmatpush.bf16.msra.mxu1 %v1060_v11  ;;  %640 = vmatpush.bf16.msrb.mxu2 %v1077_v31  ;;  %v1078_v11 = vld [vmem:[%s1598_s5 + $0x4] sm:$0xf]  ;;  %v669_v31 = vld [vmem:[%s1599_s6] sm:$0x3] }
  0x31   : > { %722 = vmatpush.bf16.msrb.mxu3 %v1035_v58 }
  0x32   : > { %462 = vmatpush.bf16.msra.mxu0 %v1051_v12  ;;  %v1011_v12 = vor.u32 %v1079_v10, %v1010_v9 }
  0x33   : > { %476 = vmatpush.bf16.msra.mxu1 %v1059_v13  ;;  %641 = vmatpush.bf16.msrb.mxu2 %v1076_v32  ;;  %v1012_v13 = vld [vmem:[%s1598_s5 + $0x8] sm:$0xf0]  ;;  %v308_v32 = vld [vmem:[%s1449_s14] sm:$0xff] }
  0x35   : > { %723 = vmatpush.bf16.msrb.mxu3 %v1027_v0 }
  0x36   : > { %463 = vmatpush.bf16.msra.mxu0 %v1050_v14  ;;  %v1015_v14 = vor.u32 %v1078_v11, %v1012_v13 }
  0x37   : > { %477 = vmatpush.bf16.msra.mxu1 %v1058_v15  ;;  %642 = vmatpush.bf16.msrb.mxu2 %v1075_v34  ;;  %v311_v34 = vunpack.c.h.bf16 %v308_v32 }
  0x39   : > { %464 = vmatmul.bf16.vlgmr.msra.gmra.mxu0 %v872_v20  ;;  %724 = vmatpush.bf16.msrb.mxu3 %v1019_v6 }
  0x3a   : > { %478 = vmatmul.bf16.vlgmr.msra.gmra.mxu1 %v876_v21  ;;  %736 = vmatpush.bf16.msrb.mxu0 %v1039_v60 }
  0x3b   : > { %643 = vmatpush.bf16.msrb.mxu2 %v1074_v38  ;;  %v671_v38 = vperm.slane %v669_v31, 0 }
  0x3d   : > { %725 = vmatpush.bf16.msrb.mxu3 %v1011_v12 }
  0x3e   : > { %737 = vmatpush.bf16.msrb.mxu0 %v1031_v2 }
  0x42   : > { %738 = vmatpush.bf16.msrb.mxu0 %v1023_v8 }
  0x46   : > { %739 = vmatpush.bf16.msrb.mxu0 %v1015_v14 }
  0xb6   : > { %v465_v35 = vpop.f32.mrf.mxu0 }
  0xb7   : > { %v479_v36 = vpop.f32.mrf.mxu1  ;;  %v466_v37 = vadd.f32 %v1150_v33, %v465_v35 }
  0xb9   : > { %v480_v39 = vadd.f32 %v479_v36, %v466_v37 }
  0xbb   : > { %v484_v40 = vmax.f32 %v480_v39, 0.0  ;;  %v309_v39 = vld [vmem:[%s1449_s14 + $0x8] sm:$0xff]  ;;  %s770_s14 = scalar_lea.hbm %s1600_s7, %s1086_s15 }
  0xbc   : > { %s773_s19 = sshll.u32 %s770_s14, 4  ;;  %s774_s19 = int_to_ptr.hbm [resolvable:$true] %s773_s19 }
  0xbd   : > { %490 = vst.msk [vmem:[#allocation2 + $0x1] sm:$0xff] %vm489_vm1, %v484_v40  ;;  %s1226_s20 = sshra.s32 %s774_s19, 4  ;;  %s1227_s20 = int_to_ptr.hbm [resolvable:$true] %s1226_s20 }
  0xbe   : > { %v467_v41 = vpop.f32.mrf.mxu0  ;;  %s1228_s21 = scalar_lea.hbm %s1227_s20, 32  ;;  %p1233_p3 = scmp.lt.s32.totalorder %s1227_s20, %s1600_s7 }
  0xbf   : > { %v468_v42 = vadd.f32 %v1150_v33, %v467_v41  ;;  %v481_v43 = vpop.f32.mrf.mxu1  ;;  %v672_v33 = vperm.slane %v669_v31, 1  ;;  %v310_v41 = vunpack.c.l.bf16 %v308_v32  ;;  %p1229_p0 = scmp.ne.s32.totalorder %s1227_s20, %s1228_s21  ;;  %p1234_p4 = scmp.lt.s32.totalorder %s1232_s29, %s1228_s21 }
  0xc1   : > { %v482_v44 = vadd.f32 %v481_v43, %v468_v42  ;;  %p1230_p1 = pnand %p1229_p0, %p1367_p5  ;;  %p1235_p7 = por %p1234_p4, %p1233_p3 }
  0xc3   : > { %v485_v45 = vmax.f32 %v482_v44, 0.0  ;;  %v313_v44 = vunpack.c.h.bf16 %v309_v39  ;;  %p1231_p2 = pneg %p1230_p1 }
  0xc4   : > { %v503_v46 = vld [vmem:[#allocation2 + $0x1] sm:$0xff] }
  0xc5   : > { %491 = vst.msk [vmem:[#allocation2 + $0x9] sm:$0xff] %vm489_vm1, %v485_v45  ;;  %v492_v48 = vld [vmem:[#allocation2] sm:$0xff]  ;;  %p1236_p8 = pnand %p1235_p7, %p1231_p2 }
  0xcc   : > { %v504_v47 = vld [vmem:[#allocation2 + $0x9] sm:$0xff] }
  0xcd   : > { %v493_v49 = vld [vmem:[#allocation2 + $0x8] sm:$0xff]  ;;  %v505_v50 = vpack.c.bf16 %v504_v47, %v503_v46 }
  0xce   : > { %v494_v51 = vpack.c.bf16 %v493_v49, %v492_v48  ;;  %v597_v52 = vld [vmem:[#allocation2 + $0x2] sm:$0xff]  ;;  %v598_v53 = vld [vmem:[#allocation2 + $0xa] sm:$0xff] }
  0xcf   : > { %965 = vmatmul.msk.bf16.vlgmr.msra.gmra.mxu2 %vm489_vm1, %v505_v50  ;;  %v599_v54 = vpack.c.bf16 %v598_v53, %v597_v52 }
  0xd0   : > { %982 = vmatmul.msk.bf16.vlgmr.msra.gmra.mxu3 %vm489_vm1, %v494_v51  ;;  %v312_v51 = vunpack.c.l.bf16 %v309_v39 }
  0xdf   : > { %1007 = vmatmul.msk.bf16.vlgmr.msrb.gmra.mxu2 %vm489_vm1, %v599_v54 }
 0x152   : > { %v551_v15 = vpop.f32.mrf.mxu2 }
 0x153   : > { %v592_v17 = vpop.f32.mrf.mxu3 }
 0x154   : > { %v593_v19 = vadd.f32 %v592_v17, %v551_v15 }
 0x15a   : > { %v553_v16 = vpop.f32.mrf.mxu2 }
 0x15b   : > { %v594_v20 = vpop.f32.mrf.mxu3 }
 0x15c   : > { %v595_v23 = vadd.f32 %v594_v20, %v553_v16 }
 0x162   : > { %v645_v18 = vpop.f32.mrf.mxu2 }
 0x163   : > { %v650_v21 = vadd.f32 %v645_v18, %v593_v19 }
 0x165   : > { %v656_v25 = vadd.f32 %v1151_v22, %v650_v21 }
 0x167   : > { %v658_v28 = vmax.f32 %v656_v25, 0.0 }
 0x16a   : > { %v647_v24 = vpop.f32.mrf.mxu2 }
 0x16b   : > { %v651_v26 = vadd.f32 %v647_v24, %v595_v23 }
 0x16d   : > { %v657_v27 = vadd.f32 %v1151_v22, %v651_v26 }
 0x16f   : > { %v659_v29 = vmax.f32 %v657_v27, 0.0 }
 0x171   : > { %v660_v30 = vpack.c.bf16 %v659_v29, %v658_v28 }
 0x173   : > { %1040 = vmatmul.msk.bf16.vlgmr.msrb.gmra.mxu3 %vm489_vm1, %v660_v30  ;;  %1041 = vmatmul.msk.bf16.vlgmr.msrb.gmra.mxu0 %vm489_vm1, %v660_v30 }
 0x1f0   : > { %v741_v35 = vpop.f32.mrf.mxu0 }
 0x1f1   : > { %v742_v36 = vadd.f32 %v741_v35, %v672_v33 }
 0x1f3   : > { %v747_v37 = vadd.f32 %v742_v36, %v311_v34 }
 0x1f5   : > { %v751_v40 = vmax.f32 %v747_v37, 0.0 }
 0x1f6   : > { %v727_v42 = vpop.f32.mrf.mxu3 }
 0x1f7   : > { %755 = vst [vmem:[%s301_s13 + $0x8] sm:$0xff] %v751_v40  ;;  %v728_v43 = vadd.f32 %v727_v42, %v671_v38 }
 0x1f8   : > { %v743_v45 = vpop.f32.mrf.mxu0 }
 0x1f9   : > { %v746_v46 = vadd.f32 %v728_v43, %v310_v41  ;;  %v744_v47 = vadd.f32 %v743_v45, %v672_v33 }
 0x1fb   : > { %v750_v48 = vmax.f32 %v746_v46, 0.0  ;;  %v749_v49 = vadd.f32 %v744_v47, %v313_v44 }
 0x1fd   : > { %754 = vst [vmem:[%s301_s13] sm:$0xff] %v750_v48  ;;  %v753_v50 = vmax.f32 %v749_v49, 0.0 }
 0x1fe   : > { %v729_v52 = vpop.f32.mrf.mxu3 }
 0x1ff   : > { %757 = vst [vmem:[%s301_s13 + $0x18] sm:$0xff] %v753_v50  ;;  %v730_v53 = vadd.f32 %v729_v52, %v671_v38 }
 0x201   : > { %v748_v54 = vadd.f32 %v730_v53, %v312_v51 }
 0x203   : > { %v752_v55 = vmax.f32 %v748_v54, 0.0 }
 0x205   : > { %756 = vst [vmem:[%s301_s13 + $0x10] sm:$0xff] %v752_v55 }
 0x206   : > { %1239 = shalt.err (!%p1236_p8)
}
 0x207   : > { %s1287_s8 = smov 256   ;;  %s1288_s13 = smov 16  }
 0x208   : > { %1095 = dma.vmem_to_hbm [thread:$0]  (%p1367_p5), %s772_s18, 512, %s774_s19, %s759_s28, %s1287_s8, %s1287_s8, %s1288_s13  }
 0x209 PF: > { %p1112_p9 = scmp.ge.s32.totalorder %s1282_s27, 2  ;;  %s788_s17 = sand.u32 1, %s1270_s24  }
 0x20a   : > { %s789_s16 = scalar_lea.sflag [#allocation5], %s788_s17 }
 0x20b   : > { %p1105_p10 = pnand %p1112_p9, %p1371_p6 }
 0x20d   : > { %p1106_p11 = pneg %p1105_p10 }
 0x20f   : > { %1265 = dma.done.wait (%p1106_p11), %s789_s16, 512  }
 0x210   : > { %1267 = vsyncadd (%p1106_p11), %s789_s16, 4294966784  ;;  %p19_p12 = scmp.ge.s32.totalorder %s1354_s30, 4   ;;  %s1604_s24 = smov %s1274_s25 }
 0x211   : > { %s1605_s25 = smov %s1278_s26  ;;  %s1606_s26 = smov %s1365_s10 }
 0x212   : > { %s1607_s27 = smov %s1354_s30  ;;  %21 = sbr.rel (!%p19_p12) target bundleno = 5 (0x5), region = 94 }
 0x217   :  { %795 = vsyncpa [#allocation4], 1 }
 0x218   :  { %797 = vsyncpa [#allocation4 + $0x1], 1 }
 0x219   :  { %798 = vsyncpa [#allocation7], 1 }
 0x21a   :  { %799 = vsyncpa [#allocation5], 1 }
 0x21b   :  { %801 = vsyncpa [#allocation5 + $0x1], 1 }

</bundles_post_ra>
